<compile_context>
chip_gen: v7x
topology: tpu7x:2x2x1
jax: 0.10.0
libtpu: 0.0.40
codegen_flags: <defaults>
</compile_context>

<pallas_src>
import math

import jax
import jax.numpy as jnp
from jax.experimental import pallas as pl
from jax.experimental.pallas import tpu as pltpu

# ---------------------------------------------------------------------------
# Model hyper-parameters (small, consistent with the module's forward)
# ---------------------------------------------------------------------------
BATCH = 2
SEQ = 8
HIDDEN = 32
HEADS = 4
D_K = HIDDEN // HEADS


def _mha_kernel(x_ref, mask_ref, qkv_w_ref, qkv_b_ref, wo_ref, bo_ref, out_ref):
    """Whole multi-head-attention forward in one invocation.

    x_ref     : (3, B, S, H)         stacked [query, key, value] inputs
    mask_ref  : (B, S, S)            1 = attend, 0 = masked
    qkv_w_ref : (3*B*HEADS, H, D_K)  transposed, head-split, batch-tiled weights
                                     (1/sqrt(d_k) folded into the Q part)
    qkv_b_ref : (3*B*HEADS, 1, D_K)
    wo_ref    : (B*HEADS, D_K, H)    head-split, batch-tiled output weights
    bo_ref    : (1, 1, H)
    out_ref   : (B, S, H)
    """
    _, B, S, H = x_ref.shape
    d_k = qkv_w_ref.shape[-1]
    heads = H // d_k
    bh = B * heads

    # Replicate activations per head inside VMEM (leading-dim broadcast only:
    # no cross-lane relayout, and HBM traffic stays at the unreplicated size).
    x = x_ref[...]                                           # (3, B, S, H)
    xr = x.reshape(3 * B, S, H)
    xr = jnp.broadcast_to(xr[:, None], (3 * B, heads, S, H))
    xr = xr.reshape(3 * bh, S, H)                            # (3*B*HEADS, S, H)

    # Fused Q/K/V projection: ONE batched dot_general over (proj, batch, head).
    # The head split is encoded in the weight layout -> no lane slices and no
    # transposes anywhere in the kernel.
    qkv = jnp.einsum("nse,ned->nsd", xr, qkv_w_ref[...],
                     preferred_element_type=jnp.float32) + qkv_b_ref[...]
    q = qkv[0 * bh:1 * bh]                                   # (B*HEADS, S, d_k)
    k = qkv[1 * bh:2 * bh]
    v = qkv[2 * bh:3 * bh]

    # Additive mask bias in FMA form (no compare/select), broadcast over heads.
    bias = (mask_ref[...] - 1.0) * jnp.float32(1e9)          # 0 keep / -1e9 masked
    bias = jnp.broadcast_to(bias[:, None], (B, heads, S, S)).reshape(bh, S, S)

    # One batched attention for all (batch, head) pairs and ONE softmax.
    s = jnp.einsum("nqd,nkd->nqk", q, k,
                   preferred_element_type=jnp.float32) + bias          # (BH, S, S)
    m = jnp.max(s, axis=-1, keepdims=True)
    e = jnp.exp(s - m)
    p = e * pl.reciprocal(jnp.sum(e, axis=-1, keepdims=True), approx=True)
    # TODO(synk): dropout on p skipped (identity in eval mode).
    ctx = jnp.einsum("nqk,nkd->nqd", p, v,
                     preferred_element_type=jnp.float32)                # (BH, S, d_k)

    # Output projection with the head concat folded in: per-(batch, head)
    # partial products, then a cheap major-axis sum over heads.
    o = jnp.einsum("nsd,ndo->nso", ctx, wo_ref[...],
                   preferred_element_type=jnp.float32)                  # (BH, S, H)
    out = jnp.sum(o.reshape(B, heads, S, H), axis=1) + bo_ref[...]      # (B, S, H)
    out_ref[...] = out.astype(out_ref.dtype)


def prepare_params(params, batch_size):
    """ONE-TIME (init-time) weight repacking.

    Keeps every transpose / head-split / batch-tile / bias-reshape out of the
    per-call path (review item: pre-transpose weights once). PyTorch Linear
    weights are (out, in); we transpose once so y = x @ W + b, fold 1/sqrt(d_k)
    into the Q weights, split heads, and tile over batch so the kernel's fused
    einsum batch axis is (proj, batch, head).
    """
    scale = 1.0 / math.sqrt(D_K)
    w_stack = jnp.stack([params["wq"].T * scale,
                         params["wk"].T,
                         params["wv"].T])                       # (3, H, H)
    b_stack = jnp.stack([params["bq"] * scale,
                         params["bk"],
                         params["bv"]])                         # (3, H)

    # (3, H, H) -> (3, HEADS, H, D_K): per-head slabs of the transposed weights.
    w_heads = w_stack.reshape(3, HIDDEN, HEADS, D_K).transpose(0, 2, 1, 3)
    qkv_w = jnp.broadcast_to(w_heads[:, None],
                             (3, batch_size, HEADS, HIDDEN, D_K))
    qkv_w = qkv_w.reshape(3 * batch_size * HEADS, HIDDEN, D_K)

    b_heads = b_stack.reshape(3, HEADS, D_K)
    qkv_b = jnp.broadcast_to(b_heads[:, None],
                             (3, batch_size, HEADS, D_K))
    qkv_b = qkv_b.reshape(3 * batch_size * HEADS, 1, D_K)

    wo_heads = params["wo"].T.reshape(HEADS, D_K, HIDDEN)       # (HEADS, D_K, H)
    wo = jnp.broadcast_to(wo_heads[None],
                          (batch_size, HEADS, D_K, HIDDEN))
    wo = wo.reshape(batch_size * HEADS, D_K, HIDDEN)

    bo = params["bo"].reshape(1, 1, HIDDEN)
    return {"qkv_w": qkv_w, "qkv_b": qkv_b, "wo": wo, "bo": bo}


def multi_head_attention(query, key, value, mask, prepped):
    """query/key/value: (B, S, H) f32; mask: (B, S, S); prepped: prepare_params()."""
    B, S, H = query.shape
    # One tiny per-call stack so the kernel sees a single activation ref
    # (one DMA instead of three); per-head replication happens in VMEM.
    x_stack = jnp.stack([query, key, value])                    # (3, B, S, H)

    vmem = lambda: pl.BlockSpec(memory_space=pltpu.MemorySpace.VMEM)
    return pl.pallas_call(
        _mha_kernel,
        out_shape=jax.ShapeDtypeStruct((B, S, H), query.dtype),
        in_specs=[vmem() for _ in range(6)],
        out_specs=vmem(),
    )(x_stack, mask,
      prepped["qkv_w"], prepped["qkv_b"], prepped["wo"], prepped["bo"])


def _reference(query, key, value, mask, params):
    """Pure-JAX reference mirroring the PyTorch forward (eval mode)."""
    B, S, H = query.shape

    def lin(x, w, b):
        return x @ w.T + b

    Q = lin(query, params["wq"], params["bq"]).reshape(B, S, HEADS, D_K).transpose(0, 2, 1, 3)
    K = lin(key,   params["wk"], params["bk"]).reshape(B, S, HEADS, D_K).transpose(0, 2, 1, 3)
    V = lin(value, params["wv"], params["bv"]).reshape(B, S, HEADS, D_K).transpose(0, 2, 1, 3)

    scores = jnp.einsum("bhqd,bhkd->bhqk", Q, K) / math.sqrt(D_K)
    scores = jnp.where(mask[:, None, :, :] == 0, -1e9, scores)
    p = jax.nn.softmax(scores, axis=-1)
    x = jnp.einsum("bhqk,bhkd->bhqd", p, V)
    x = x.transpose(0, 2, 1, 3).reshape(B, S, H)
    return lin(x, params["wo"], params["bo"])


def _init_params(key):
    ks = jax.random.split(key, 8)
    bound = 1.0 / math.sqrt(HIDDEN)

    def uni(k, shape):
        return jax.random.uniform(k, shape, jnp.float32, -bound, bound)

    return {
        "wq": uni(ks[0], (HIDDEN, HIDDEN)), "bq": uni(ks[1], (HIDDEN,)),
        "wk": uni(ks[2], (HIDDEN, HIDDEN)), "bk": uni(ks[3], (HIDDEN,)),
        "wv": uni(ks[4], (HIDDEN, HIDDEN)), "bv": uni(ks[5], (HIDDEN,)),
        "wo": uni(ks[6], (HIDDEN, HIDDEN)), "bo": uni(ks[7], (HIDDEN,)),
    }


if __name__ == "__main__":
    root = jax.random.PRNGKey(0)
    kp, kq, kk, kv, km = jax.random.split(root, 5)

    params = _init_params(kp)
    prepped = prepare_params(params, BATCH)   # one-time weight repack

    query = jax.random.normal(kq, (BATCH, SEQ, HIDDEN), jnp.float32)
    key_in = jax.random.normal(kk, (BATCH, SEQ, HIDDEN), jnp.float32)
    value = jax.random.normal(kv, (BATCH, SEQ, HIDDEN), jnp.float32)

    # Padding-style mask: 1 = attend, 0 = masked; guarantee >=1 keep per row so
    # the softmax never degenerates (matches real BERT padding masks).
    mask = (jax.random.uniform(km, (BATCH, SEQ, SEQ)) > 0.2).astype(jnp.float32)
    mask = mask.at[:, :, 0].set(1.0)

    out = multi_head_attention(query, key_in, value, mask, prepped)
    out = jax.block_until_ready(out)

    ref = _reference(query, key_in, value, mask, params)
    # Slightly relaxed tolerance: softmax denominator uses the EUP approximate
    # reciprocal and masked scores use an additive -1e9 bias.
    assert jnp.allclose(out, ref, atol=2e-3, rtol=2e-3), "mismatch vs reference"

    print("KERNEL_OK")
</pallas_src>

<mosaic_0001>
module attributes {stable_mosaic.version = 11 : i64} {
  func.func @_mha_kernel(%arg0: memref<3x2x8x32xf32, #tpu.memory_space<vmem>>, %arg1: memref<2x8x8xf32, #tpu.memory_space<vmem>>, %arg2: memref<24x32x8xf32, #tpu.memory_space<vmem>>, %arg3: memref<24x1x8xf32, #tpu.memory_space<vmem>>, %arg4: memref<8x8x32xf32, #tpu.memory_space<vmem>>, %arg5: memref<1x1x32xf32, #tpu.memory_space<vmem>>, %arg6: memref<2x8x32xf32, #tpu.memory_space<vmem>>) attributes {dimension_semantics = [], scalar_prefetch = 0 : i64, scratch_operands = 0 : i64, tpu.core_type = #tpu.core_type<tc>} {
    %c0 = arith.constant 0 : index
    %c0_0 = arith.constant 0 : index
    %c0_1 = arith.constant 0 : index
    %c0_2 = arith.constant 0 : index
    %0 = vector.load %arg0[%c0, %c0_0, %c0_1, %c0_2] : memref<3x2x8x32xf32, #tpu.memory_space<vmem>>, vector<3x2x8x32xf32>
    %1 = vector.shape_cast %0 : vector<3x2x8x32xf32> to vector<6x8x32xf32>
    %2 = vector.shape_cast %1 : vector<6x8x32xf32> to vector<6x1x8x32xf32>
    %3 = vector.shape_cast %2 : vector<6x1x8x32xf32> to vector<6x1x8x32xf32>
    %4 = vector.broadcast %3 : vector<6x1x8x32xf32> to vector<6x4x8x32xf32>
    %5 = vector.shape_cast %4 : vector<6x4x8x32xf32> to vector<24x8x32xf32>
    %c0_3 = arith.constant 0 : index
    %c0_4 = arith.constant 0 : index
    %c0_5 = arith.constant 0 : index
    %6 = vector.load %arg2[%c0_3, %c0_4, %c0_5] : memref<24x32x8xf32, #tpu.memory_space<vmem>>, vector<24x32x8xf32>
    "tpu.trace_start"() <{level = 10 : i32, message = "nse,ned->nsd"}> : () -> ()
    %cst = arith.constant dense<0.000000e+00> : vector<24x8x8xf32>
    %7 = tpu.matmul %5, %6, %cst {dimension_numbers = #tpu.dot_dimension_numbers<[2], [1], [1], [2], [0, 0, 0, 1, 1, 2], [0], [0]>} : vector<24x8x32xf32>, vector<24x32x8xf32>, vector<24x8x8xf32> -> vector<24x8x8xf32>
    "tpu.trace_stop"() : () -> ()
    %c0_6 = arith.constant 0 : index
    %c0_7 = arith.constant 0 : index
    %c0_8 = arith.constant 0 : index
    %8 = vector.load %arg3[%c0_6, %c0_7, %c0_8] : memref<24x1x8xf32, #tpu.memory_space<vmem>>, vector<24x1x8xf32>
    %9 = vector.broadcast %8 : vector<24x1x8xf32> to vector<24x8x8xf32>
    %10 = arith.addf %7, %9 : vector<24x8x8xf32>
    %11 = vector.extract_strided_slice %10 {offsets = [0, 0, 0], sizes = [8, 8, 8], strides = [1, 1, 1]} : vector<24x8x8xf32> to vector<8x8x8xf32>
    %12 = vector.extract_strided_slice %10 {offsets = [8, 0, 0], sizes = [8, 8, 8], strides = [1, 1, 1]} : vector<24x8x8xf32> to vector<8x8x8xf32>
    %13 = vector.extract_strided_slice %10 {offsets = [16, 0, 0], sizes = [8, 8, 8], strides = [1, 1, 1]} : vector<24x8x8xf32> to vector<8x8x8xf32>
    %c0_9 = arith.constant 0 : index
    %c0_10 = arith.constant 0 : index
    %c0_11 = arith.constant 0 : index
    %14 = vector.load %arg1[%c0_9, %c0_10, %c0_11] : memref<2x8x8xf32, #tpu.memory_space<vmem>>, vector<2x8x8xf32>
    %cst_12 = arith.constant 1.000000e+00 : f32
    %15 = vector.broadcast %cst_12 : f32 to vector<2x8x8xf32>
    %16 = arith.subf %14, %15 : vector<2x8x8xf32>
    %cst_13 = arith.constant 1.000000e+09 : f32
    %17 = vector.broadcast %cst_13 : f32 to vector<2x8x8xf32>
    %18 = arith.mulf %16, %17 : vector<2x8x8xf32>
    %19 = vector.shape_cast %18 : vector<2x8x8xf32> to vector<2x1x8x8xf32>
    %20 = vector.shape_cast %19 : vector<2x1x8x8xf32> to vector<2x1x8x8xf32>
    %21 = vector.broadcast %20 : vector<2x1x8x8xf32> to vector<2x4x8x8xf32>
    %22 = vector.shape_cast %21 : vector<2x4x8x8xf32> to vector<8x8x8xf32>
    "tpu.trace_start"() <{level = 10 : i32, message = "nqd,nkd->nqk"}> : () -> ()
    %cst_14 = arith.constant dense<0.000000e+00> : vector<8x8x8xf32>
    %23 = tpu.matmul %11, %12, %cst_14 {dimension_numbers = #tpu.dot_dimension_numbers<[2], [2], [1], [1], [0, 0, 0, 1, 1, 1], [0], [0]>} : vector<8x8x8xf32>, vector<8x8x8xf32>, vector<8x8x8xf32> -> vector<8x8x8xf32>
    "tpu.trace_stop"() : () -> ()
    %24 = arith.addf %23, %22 : vector<8x8x8xf32>
    %cst_15 = arith.constant dense<0xFF800000> : vector<8x8xf32>
    %25 = vector.multi_reduction <maximumf>, %24, %cst_15 [2] : vector<8x8x8xf32> to vector<8x8xf32>
    %26 = vector.shape_cast %25 : vector<8x8xf32> to vector<8x8x1xf32>
    %27 = vector.broadcast %26 : vector<8x8x1xf32> to vector<8x8x8xf32>
    %28 = arith.subf %24, %27 : vector<8x8x8xf32>
    %29 = math.exp %28 : vector<8x8x8xf32>
    %cst_16 = arith.constant dense<0.000000e+00> : vector<8x8xf32>
    %30 = vector.multi_reduction <add>, %29, %cst_16 [2] : vector<8x8x8xf32> to vector<8x8xf32>
    %31 = vector.shape_cast %30 : vector<8x8xf32> to vector<8x8x1xf32>
    %32 = tpu.reciprocal %31 {approx = true} : vector<8x8x1xf32> -> vector<8x8x1xf32>
    %33 = vector.broadcast %32 : vector<8x8x1xf32> to vector<8x8x8xf32>
    %34 = arith.mulf %29, %33 : vector<8x8x8xf32>
    "tpu.trace_start"() <{level = 10 : i32, message = "nqk,nkd->nqd"}> : () -> ()
    %cst_17 = arith.constant dense<0.000000e+00> : vector<8x8x8xf32>
    %35 = tpu.matmul %34, %13, %cst_17 {dimension_numbers = #tpu.dot_dimension_numbers<[2], [1], [1], [2], [0, 0, 0, 1, 1, 2], [0], [0]>} : vector<8x8x8xf32>, vector<8x8x8xf32>, vector<8x8x8xf32> -> vector<8x8x8xf32>
    "tpu.trace_stop"() : () -> ()
    %c0_18 = arith.constant 0 : index
    %c0_19 = arith.constant 0 : index
    %c0_20 = arith.constant 0 : index
    %36 = vector.load %arg4[%c0_18, %c0_19, %c0_20] : memref<8x8x32xf32, #tpu.memory_space<vmem>>, vector<8x8x32xf32>
    "tpu.trace_start"() <{level = 10 : i32, message = "nsd,ndo->nso"}> : () -> ()
    %cst_21 = arith.constant dense<0.000000e+00> : vector<8x8x32xf32>
    %37 = tpu.matmul %35, %36, %cst_21 {dimension_numbers = #tpu.dot_dimension_numbers<[2], [1], [1], [2], [0, 0, 0, 1, 1, 2], [0], [0]>} : vector<8x8x8xf32>, vector<8x8x32xf32>, vector<8x8x32xf32> -> vector<8x8x32xf32>
    "tpu.trace_stop"() : () -> ()
    %38 = vector.shape_cast %37 : vector<8x8x32xf32> to vector<2x4x8x32xf32>
    %cst_22 = arith.constant dense<0.000000e+00> : vector<2x8x32xf32>
    %39 = vector.multi_reduction <add>, %38, %cst_22 [1] : vector<2x4x8x32xf32> to vector<2x8x32xf32>
    %c0_23 = arith.constant 0 : index
    %c0_24 = arith.constant 0 : index
    %c0_25 = arith.constant 0 : index
    %40 = vector.load %arg5[%c0_23, %c0_24, %c0_25] : memref<1x1x32xf32, #tpu.memory_space<vmem>>, vector<1x1x32xf32>
    %41 = vector.broadcast %40 : vector<1x1x32xf32> to vector<2x8x32xf32>
    %42 = arith.addf %39, %41 : vector<2x8x32xf32>
    %c0_26 = arith.constant 0 : index
    %c0_27 = arith.constant 0 : index
    %c0_28 = arith.constant 0 : index
    %43 = vector.load %arg6[%c0_26, %c0_27, %c0_28] : memref<2x8x32xf32, #tpu.memory_space<vmem>>, vector<2x8x32xf32>
    tpu.vector_store %arg6[%c0_26, %c0_27, %c0_28], %42 {strides = array<i32>} : memref<2x8x32xf32, #tpu.memory_space<vmem>>, vector<2x8x32xf32>,
    return
  }
}

</mosaic_0001>

<bundles_post_ra>
// kernel: tpu_custom_call.1
= control target key start
LH: loop header
LB: loop body
LE: loop exit
PB: predicated region body
PF: predicated region fallthrough
CT: control target
= control target key end

     0   :  { %v4754_v3 = vmov 0.0|0.0   ;;  %vm4755_vm0 = vmmov 0   ;;  %v4756_v11 = vmov 0.0   ;;  %vm294_vm1 = vcmask 261120   ;;  %s5508_s0 = inlined_call_operand.vmem [shape: f32[3,2,8,32], index: 0, kind: input, shape index: {}]   ;;  %s5509_s1 = inlined_call_operand.vmem [shape: f32[2,8,8], index: 1, kind: input, shape index: {}]   ;;  %s5510_s2 = inlined_call_operand.vmem [shape: f32[24,32,8], index: 2, kind: input, shape index: {}]   ;;  %s5511_s3 = inlined_call_operand.vmem [shape: f32[24,1,8], index: 3, kind: input, shape index: {}]   ;;  %s5512_s4 = inlined_call_operand.vmem [shape: f32[8,8,32], index: 4, kind: input, shape index: {}]   ;;  %s5513_s5 = inlined_call_operand.vmem [shape: f32[1,1,32], index: 5, kind: input, shape index: {}]   ;;  %s5514_s6 = inlined_call_operand.hbm [shape: f32[2,8,32], index: 6, kind: output, shape index: {}]  }
   0x1   :  { %v30_v0 = vld [vmem:[%s5510_s2] sm:$0xff]  ;;  %v31_v1 = vld [vmem:[%s5510_s2 + $0x8] sm:$0xff]  ;;  %4548 = vmatprep.subr.bf16.mxu0 %v4754_v3  ;;  %4554 = vmatprep.subr.bf16.mxu1 %v4754_v3  ;;  %v32_v6 = vld [vmem:[%s5510_s2 + $0x10] sm:$0xff] }
   0x2   :  { %v34_v2 = vld [vmem:[%s5510_s2 + $0x20] sm:$0xff]  ;;  %v4549_v4 = vpack.c.bf16 %v31_v1, %v30_v0  ;;  %v35_v5 = vld [vmem:[%s5510_s2 + $0x28] sm:$0xff]  ;;  %v33_v7 = vld [vmem:[%s5510_s2 + $0x18] sm:$0xff]  ;;  %4172 = vmatprep.mubr.msk.f32.mxu0 %vm4755_vm0, %v4756_v11  ;;  %4183 = vmatprep.mubr.msk.f32.mxu1 %vm4755_vm0, %v4756_v11 }
   0x3   :  { %v4555_v8 = vpack.c.bf16 %v35_v5, %v34_v2  ;;  %v36_v9 = vld [vmem:[%s5510_s2 + $0x30] sm:$0xff]  ;;  %v37_v10 = vld [vmem:[%s5510_s2 + $0x38] sm:$0xff]  ;;  %v4552_v12 = vpack.c.bf16 %v33_v7, %v32_v6  ;;  %v38_v14 = vld [vmem:[%s5510_s2 + $0x40] sm:$0xff] }
   0x4   :  { %4550 = vmatpush3.bf16.msra.mxu0 %v4549_v4  ;;  %v4558_v13 = vpack.c.bf16 %v37_v10, %v36_v9  ;;  %v39_v15 = vld [vmem:[%s5510_s2 + $0x48] sm:$0xff]  ;;  %v42_v16 = vld [vmem:[%s5510_s2 + $0x60] sm:$0xff]  ;;  %v40_v21 = vld [vmem:[%s5510_s2 + $0x50] sm:$0xff] }
   0x5   :  { %4556 = vmatpush3.bf16.msra.mxu1 %v4555_v8  ;;  %4551 = vmatprep.subr.bf16.mxu0 %v4754_v3  ;;  %v43_v17 = vld [vmem:[%s5510_s2 + $0x68] sm:$0xff]  ;;  %v24_v18 = vld [vmem:[%s5508_s0] sm:$0xff]  ;;  %v4561_v19 = vpack.c.bf16 %v39_v15, %v38_v14  ;;  %v41_v22 = vld [vmem:[%s5510_s2 + $0x58] sm:$0xff] }
   0x6   :  { %4557 = vmatprep.subr.bf16.mxu1 %v4754_v3  ;;  %v4567_v20 = vpack.c.bf16 %v43_v17, %v42_v16  ;;  %v44_v23 = vld [vmem:[%s5510_s2 + $0x70] sm:$0xff]  ;;  %v45_v24 = vld [vmem:[%s5510_s2 + $0x78] sm:$0xff]  ;;  %v4564_v25 = vpack.c.bf16 %v41_v22, %v40_v21  ;;  %v46_v27 = vld [vmem:[%s5510_s2 + $0x80] sm:$0xff] }
   0x7   :  { %v4570_v26 = vpack.c.bf16 %v45_v24, %v44_v23  ;;  %v47_v28 = vld [vmem:[%s5510_s2 + $0x88] sm:$0xff]  ;;  %v50_v29 = vld [vmem:[%s5510_s2 + $0xa0] sm:$0xff]  ;;  %v48_v33 = vld [vmem:[%s5510_s2 + $0x90] sm:$0xff] }
   0x8   :  { %4553 = vmatpush3.bf16.msra.mxu0 %v4552_v12  ;;  %v51_v30 = vld [vmem:[%s5510_s2 + $0xa8] sm:$0xff]  ;;  %v4573_v31 = vpack.c.bf16 %v47_v28, %v46_v27  ;;  %v49_v34 = vld [vmem:[%s5510_s2 + $0x98] sm:$0xff]  ;;  %v52_v35 = vld [vmem:[%s5510_s2 + $0xb0] sm:$0xff] }
   0x9   :  { %4559 = vmatpush3.bf16.msra.mxu1 %v4558_v13  ;;  %4560 = vmatprep.subr.bf16.mxu0 %v4754_v3  ;;  %v4579_v32 = vpack.c.bf16 %v51_v30, %v50_v29  ;;  %v53_v36 = vld [vmem:[%s5510_s2 + $0xb8] sm:$0xff]  ;;  %v4576_v37 = vpack.c.bf16 %v49_v34, %v48_v33  ;;  %v54_v39 = vld [vmem:[%s5510_s2 + $0xc0] sm:$0xff]  ;;  %v55_v40 = vld [vmem:[%s5510_s2 + $0xc8] sm:$0xff] }
   0xa   :  { %4566 = vmatprep.subr.bf16.mxu1 %v4754_v3  ;;  %v4582_v38 = vpack.c.bf16 %v53_v36, %v52_v35  ;;  %v58_v41 = vld [vmem:[%s5510_s2 + $0xe0] sm:$0xff]  ;;  %v59_v42 = vld [vmem:[%s5510_s2 + $0xe8] sm:$0xff]  ;;  %v4585_v44 = vpack.c.bf16 %v55_v40, %v54_v39  ;;  %v56_v46 = vld [vmem:[%s5510_s2 + $0xd0] sm:$0xff] }
   0xb   :  { %4173 = vmatmul.mubr.msk.f32.vlgmr.msra.gmra.mrb[0].mxu0 %vm294_vm1, %v24_v18  ;;  %v25_v43 = vld [vmem:[%s5508_s0 + $0x8] sm:$0xff]  ;;  %v4591_v45 = vpack.c.bf16 %v59_v42, %v58_v41  ;;  %v57_v47 = vld [vmem:[%s5510_s2 + $0xd8] sm:$0xff] }
   0xc   :  { %4184 = vmatmul.mubr.msk.f32.vlgmr.msra.gmra.mrb[0].mxu1 %vm294_vm1, %v24_v18  ;;  %4562 = vmatpush3.bf16.msra.mxu0 %v4561_v19 }
   0xd   :  { %4568 = vmatpush3.bf16.msra.mxu1 %v4567_v20  ;;  %4563 = vmatprep.subr.bf16.mxu0 %v4754_v3 }
   0xe   :  { %4569 = vmatprep.subr.bf16.mxu1 %v4754_v3  ;;  %4194 = vmatprep.mubr.msk.f32.mxu0 %vm4755_vm0, %v4756_v11 }
   0xf   :  { %4205 = vmatprep.mubr.msk.f32.mxu1 %vm4755_vm0, %v4756_v11 }
  0x10   :  { %4565 = vmatpush3.bf16.msra.mxu0 %v4564_v25 }
  0x11   :  { %4571 = vmatpush3.bf16.msra.mxu1 %v4570_v26  ;;  %4572 = vmatprep.subr.bf16.mxu0 %v4754_v3 }
  0x12   :  { %4578 = vmatprep.subr.bf16.mxu1 %v4754_v3 }
  0x13   :  { %4195 = vmatmul.mubr.msk.f32.vlgmr.msra.gmra.mrb[2].mxu0 %vm294_vm1, %v24_v18 }
  0x14   :  { %4206 = vmatmul.mubr.msk.f32.vlgmr.msra.gmra.mrb[2].mxu1 %vm294_vm1, %v24_v18  ;;  %4574 = vmatpush3.bf16.msra.mxu0 %v4573_v31 }
  0x15   :  { %4580 = vmatpush3.bf16.msra.mxu1 %v4579_v32  ;;  %4575 = vmatprep.subr.bf16.mxu0 %v4754_v3 }
  0x16   :  { %4581 = vmatprep.subr.bf16.mxu1 %v4754_v3  ;;  %4216 = vmatprep.mubr.msk.f32.mxu0 %vm4755_vm0, %v4756_v11 }
  0x17   :  { %4227 = vmatprep.mubr.msk.f32.mxu1 %vm4755_vm0, %v4756_v11 }
  0x18   :  { %4577 = vmatpush3.bf16.msra.mxu0 %v4576_v37 }
  0x19   :  { %4583 = vmatpush3.bf16.msra.mxu1 %v4582_v38  ;;  %4584 = vmatprep.subr.bf16.mxu0 %v4754_v3 }
  0x1a   :  { %11 = vsyncpa [#allocation3], 0  ;;  %4590 = vmatprep.subr.bf16.mxu1 %v4754_v3  ;;  %v60_v48 = vld [vmem:[%s5510_s2 + $0xf0] sm:$0xff]  ;;  %v61_v49 = vld [vmem:[%s5510_s2 + $0xf8] sm:$0xff]  ;;  %v4588_v50 = vpack.c.bf16 %v57_v47, %v56_v46  ;;  %vm1999_vm2 = vcmask 64512  }
  0x1b   :  { %4217 = vmatmul.mubr.msk.f32.vlgmr.msra.gmra.mrb[4].mxu0 %vm294_vm1, %v25_v43  ;;  %v4594_v51 = vpack.c.bf16 %v61_v49, %v60_v48  ;;  %v62_v52 = vld [vmem:[%s5510_s2 + $0x100] sm:$0xff]  ;;  %v63_v53 = vld [vmem:[%s5510_s2 + $0x108] sm:$0xff]  ;;  %v64_v58 = vld [vmem:[%s5510_s2 + $0x110] sm:$0xff] }
  0x1c   :  { %4228 = vmatmul.mubr.msk.f32.vlgmr.msra.gmra.mrb[4].mxu1 %vm294_vm1, %v25_v43  ;;  %4586 = vmatpush3.bf16.msra.mxu0 %v4585_v44  ;;  %v66_v54 = vld [vmem:[%s5510_s2 + $0x120] sm:$0xff]  ;;  %v67_v55 = vld [vmem:[%s5510_s2 + $0x128] sm:$0xff]  ;;  %v4597_v56 = vpack.c.bf16 %v63_v53, %v62_v52  ;;  %v65_v59 = vld [vmem:[%s5510_s2 + $0x118] sm:$0xff] }
  0x1d   :  { %4592 = vmatpush3.bf16.msra.mxu1 %v4591_v45  ;;  %4587 = vmatprep.subr.bf16.mxu0 %v4754_v3  ;;  %v4603_v57 = vpack.c.bf16 %v67_v55, %v66_v54  ;;  %v68_v60 = vld [vmem:[%s5510_s2 + $0x130] sm:$0xff]  ;;  %v69_v61 = vld [vmem:[%s5510_s2 + $0x138] sm:$0xff]  ;;  %v4600_v62 = vpack.c.bf16 %v65_v59, %v64_v58  ;;  %v70_v0 = vld [vmem:[%s5510_s2 + $0x140] sm:$0xff] }
  0x1e   :  { %4593 = vmatprep.subr.bf16.mxu1 %v4754_v3  ;;  %4238 = vmatprep.mubr.msk.f32.mxu0 %vm4755_vm0, %v4756_v11  ;;  %v4606_v63 = vpack.c.bf16 %v69_v61, %v68_v60  ;;  %v71_v1 = vld [vmem:[%s5510_s2 + $0x148] sm:$0xff]  ;;  %v74_v2 = vld [vmem:[%s5510_s2 + $0x160] sm:$0xff]  ;;  %v26_v5 = vld [vmem:[%s5508_s0 + $0x10] sm:$0xff] }
  0x1f   :  { %4249 = vmatprep.mubr.msk.f32.mxu1 %vm4755_vm0, %v4756_v11  ;;  %v75_v4 = vld [vmem:[%s5510_s2 + $0x168] sm:$0xff]  ;;  %v4609_v6 = vpack.c.bf16 %v71_v1, %v70_v0  ;;  %v72_v8 = vld [vmem:[%s5510_s2 + $0x150] sm:$0xff]  ;;  %v73_v9 = vld [vmem:[%s5510_s2 + $0x158] sm:$0xff] }
  0x20   :  { %4589 = vmatpush3.bf16.msra.mxu0 %v4588_v50  ;;  %v4615_v7 = vpack.c.bf16 %v75_v4, %v74_v2  ;;  %v76_v10 = vld [vmem:[%s5510_s2 + $0x170] sm:$0xff]  ;;  %v77_v12 = vld [vmem:[%s5510_s2 + $0x178] sm:$0xff]  ;;  %v4612_v13 = vpack.c.bf16 %v73_v9, %v72_v8  ;;  %v78_v15 = vld [vmem:[%s5510_s2 + $0x180] sm:$0xff] }
  0x21   :  { %4595 = vmatpush3.bf16.msra.mxu1 %v4594_v51  ;;  %4596 = vmatprep.subr.bf16.mxu0 %v4754_v3  ;;  %v4618_v14 = vpack.c.bf16 %v77_v12, %v76_v10  ;;  %v79_v16 = vld [vmem:[%s5510_s2 + $0x188] sm:$0xff]  ;;  %v82_v17 = vld [vmem:[%s5510_s2 + $0x1a0] sm:$0xff]  ;;  %v80_v21 = vld [vmem:[%s5510_s2 + $0x190] sm:$0xff] }
  0x22   :  { %4602 = vmatprep.subr.bf16.mxu1 %v4754_v3  ;;  %v83_v18 = vld [vmem:[%s5510_s2 + $0x1a8] sm:$0xff]  ;;  %v4621_v19 = vpack.c.bf16 %v79_v16, %v78_v15  ;;  %v81_v22 = vld [vmem:[%s5510_s2 + $0x198] sm:$0xff]  ;;  %v84_v23 = vld [vmem:[%s5510_s2 + $0x1b0] sm:$0xff] }
  0x23   :  { %4239 = vmatmul.mubr.msk.f32.vlgmr.msra.gmra.mrb[6].mxu0 %vm294_vm1, %v25_v43  ;;  %v4627_v20 = vpack.c.bf16 %v83_v18, %v82_v17  ;;  %v85_v24 = vld [vmem:[%s5510_s2 + $0x1b8] sm:$0xff]  ;;  %v4624_v25 = vpack.c.bf16 %v81_v22, %v80_v21  ;;  %v86_v27 = vld [vmem:[%s5510_s2 + $0x1c0] sm:$0xff]  ;;  %v87_v28 = vld [vmem:[%s5510_s2 + $0x1c8] sm:$0xff] }
  0x24   :  { %4250 = vmatmul.mubr.msk.f32.vlgmr.msra.gmra.mrb[6].mxu1 %vm294_vm1, %v25_v43  ;;  %4598 = vmatpush3.bf16.msra.mxu0 %v4597_v56  ;;  %v4630_v26 = vpack.c.bf16 %v85_v24, %v84_v23  ;;  %v90_v29 = vld [vmem:[%s5510_s2 + $0x1e0] sm:$0xff]  ;;  %v91_v30 = vld [vmem:[%s5510_s2 + $0x1e8] sm:$0xff]  ;;  %v27_v31 = vld [vmem:[%s5508_s0 + $0x18] sm:$0xff]  ;;  %v4633_v32 = vpack.c.bf16 %v87_v28, %v86_v27 }
  0x25   :  { %4604 = vmatpush3.bf16.msra.mxu1 %v4603_v57  ;;  %4599 = vmatprep.subr.bf16.mxu0 %v4754_v3  ;;  %v4639_v33 = vpack.c.bf16 %v91_v30, %v90_v29  ;;  %v88_v34 = vld [vmem:[%s5510_s2 + $0x1d0] sm:$0xff]  ;;  %v89_v35 = vld [vmem:[%s5510_s2 + $0x1d8] sm:$0xff]  ;;  %v94_v40 = vld [vmem:[%s5510_s2 + $0x200] sm:$0xff] }
  0x26   :  { %4605 = vmatprep.subr.bf16.mxu1 %v4754_v3  ;;  %4260 = vmatprep.mubr.msk.f32.mxu0 %vm4755_vm0, %v4756_v11  ;;  %v92_v36 = vld [vmem:[%s5510_s2 + $0x1f0] sm:$0xff]  ;;  %v93_v37 = vld [vmem:[%s5510_s2 + $0x1f8] sm:$0xff]  ;;  %v4636_v38 = vpack.c.bf16 %v89_v35, %v88_v34  ;;  %v95_v41 = vld [vmem:[%s5510_s2 + $0x208] sm:$0xff] }
  0x27   :  { %4271 = vmatprep.mubr.msk.f32.mxu1 %vm4755_vm0, %v4756_v11  ;;  %v4642_v39 = vpack.c.bf16 %v93_v37, %v92_v36  ;;  %v98_v42 = vld [vmem:[%s5510_s2 + $0x220] sm:$0xff]  ;;  %v99_v43 = vld [vmem:[%s5510_s2 + $0x228] sm:$0xff]  ;;  %v4645_v44 = vpack.c.bf16 %v95_v41, %v94_v40  ;;  %v96_v46 = vld [vmem:[%s5510_s2 + $0x210] sm:$0xff] }
  0x28   :  { %4601 = vmatpush3.bf16.msra.mxu0 %v4600_v62  ;;  %v4651_v45 = vpack.c.bf16 %v99_v43, %v98_v42  ;;  %v97_v47 = vld [vmem:[%s5510_s2 + $0x218] sm:$0xff]  ;;  %v100_v48 = vld [vmem:[%s5510_s2 + $0x230] sm:$0xff]  ;;  %v102_v52 = vld [vmem:[%s5510_s2 + $0x240] sm:$0xff] }
  0x29   :  { %4607 = vmatpush3.bf16.msra.mxu1 %v4606_v63  ;;  %4608 = vmatprep.subr.bf16.mxu0 %v4754_v3  ;;  %v4648_v49 = vpack.c.bf16 %v97_v47, %v96_v46  ;;  %v101_v50 = vld [vmem:[%s5510_s2 + $0x238] sm:$0xff]  ;;  %v103_v53 = vld [vmem:[%s5510_s2 + $0x248] sm:$0xff]  ;;  %v28_v54 = vld [vmem:[%s5508_s0 + $0x20] sm:$0xff] }
  0x2a   :  { %4614 = vmatprep.subr.bf16.mxu1 %v4754_v3  ;;  %v4654_v51 = vpack.c.bf16 %v101_v50, %v100_v48  ;;  %v4657_v55 = vpack.c.bf16 %v103_v53, %v102_v52  ;;  %v106_v56 = vld [vmem:[%s5510_s2 + $0x260] sm:$0xff]  ;;  %v107_v57 = vld [vmem:[%s5510_s2 + $0x268] sm:$0xff]  ;;  %v104_v59 = vld [vmem:[%s5510_s2 + $0x250] sm:$0xff] }
  0x2b   :  { %4261 = vmatmul.mubr.msk.f32.vlgmr.msra.gmra.mrb[8].mxu0 %vm294_vm1, %v26_v5  ;;  %v4663_v58 = vpack.c.bf16 %v107_v57, %v106_v56  ;;  %v105_v60 = vld [vmem:[%s5510_s2 + $0x258] sm:$0xff]  ;;  %v108_v61 = vld [vmem:[%s5510_s2 + $0x270] sm:$0xff]  ;;  %v110_v1 = vld [vmem:[%s5510_s2 + $0x280] sm:$0xff] }
  0x2c   :  { %4272 = vmatmul.mubr.msk.f32.vlgmr.msra.gmra.mrb[8].mxu1 %vm294_vm1, %v26_v5  ;;  %4610 = vmatpush3.bf16.msra.mxu0 %v4609_v6  ;;  %v4660_v62 = vpack.c.bf16 %v105_v60, %v104_v59  ;;  %v109_v63 = vld [vmem:[%s5510_s2 + $0x278] sm:$0xff]  ;;  %v111_v2 = vld [vmem:[%s5510_s2 + $0x288] sm:$0xff]  ;;  %v114_v4 = vld [vmem:[%s5510_s2 + $0x2a0] sm:$0xff] }
  0x2d   :  { %4616 = vmatpush3.bf16.msra.mxu1 %v4615_v7  ;;  %4611 = vmatprep.subr.bf16.mxu0 %v4754_v3  ;;  %v4666_v0 = vpack.c.bf16 %v109_v63, %v108_v61  ;;  %v115_v6 = vld [vmem:[%s5510_s2 + $0x2a8] sm:$0xff]  ;;  %v112_v8 = vld [vmem:[%s5510_s2 + $0x290] sm:$0xff]  ;;  %v113_v9 = vld [vmem:[%s5510_s2 + $0x298] sm:$0xff] }
  0x2e   :  { %4617 = vmatprep.subr.bf16.mxu1 %v4754_v3  ;;  %4282 = vmatprep.mubr.msk.f32.mxu0 %vm4755_vm0, %v4756_v11  ;;  %v4675_v7 = vpack.c.bf16 %v115_v6, %v114_v4  ;;  %v116_v10 = vld [vmem:[%s5510_s2 + $0x2b0] sm:$0xff]  ;;  %v4672_v12 = vpack.c.bf16 %v113_v9, %v112_v8  ;;  %v118_v15 = vld [vmem:[%s5510_s2 + $0x2c0] sm:$0xff]  ;;  %v119_v16 = vld [vmem:[%s5510_s2 + $0x2c8] sm:$0xff] }
  0x2f   :  { %4293 = vmatprep.mubr.msk.f32.mxu1 %vm4755_vm0, %v4756_v11  ;;  %v29_v17 = vld [vmem:[%s5508_s0 + $0x28] sm:$0xff]  ;;  %v4681_v18 = vpack.c.bf16 %v119_v16, %v118_v15  ;;  %v120_v22 = vld [vmem:[%s5510_s2 + $0x2d0] sm:$0xff]  ;;  %v121_v23 = vld [vmem:[%s5510_s2 + $0x2d8] sm:$0xff] }
  0x30   :  { %4613 = vmatpush3.bf16.msra.mxu0 %v4612_v13  ;;  %v117_v13 = vld [vmem:[%s5510_s2 + $0x2b8] sm:$0xff]  ;;  %v124_v24 = vld [vmem:[%s5510_s2 + $0x2f0] sm:$0xff]  ;;  %v3921_v43 = vld [vmem:[%s5511_s3 + $0x8] ss:$0 sm:$0xff] }
  0x31   :  { %4619 = vmatpush3.bf16.msra.mxu1 %v4618_v14  ;;  %4620 = vmatprep.subr.bf16.mxu0 %v4754_v3  ;;  %v4678_v14 = vpack.c.bf16 %v117_v13, %v116_v10  ;;  %v3913_v46 = vld [vmem:[%s5511_s3] ss:$0 sm:$0xff]  ;;  %v3914_v50 = vld [vmem:[%s5511_s3 + $0x1] ss:$0 sm:$0xff]  ;;  %v3924_v56 = vld [vmem:[%s5511_s3 + $0xb] ss:$0 sm:$0xff] }
  0x32   :  { %4626 = vmatprep.subr.bf16.mxu1 %v4754_v3  ;;  %v3925_v4 = vld [vmem:[%s5511_s3 + $0xc] ss:$0 sm:$0xff] }
  0x33   :  { %4283 = vmatmul.mubr.msk.f32.vlgmr.msra.gmra.mrb[10].mxu0 %vm294_vm1, %v26_v5 }
  0x34   :  { %4294 = vmatmul.mubr.msk.f32.vlgmr.msra.gmra.mrb[10].mxu1 %vm294_vm1, %v26_v5  ;;  %4622 = vmatpush3.bf16.msra.mxu0 %v4621_v19  ;;  %v4669_v5 = vpack.c.bf16 %v111_v2, %v110_v1  ;;  %v122_v19 = vld [vmem:[%s5510_s2 + $0x2e0] sm:$0xff] }
  0x35   :  { %4628 = vmatpush3.bf16.msra.mxu1 %v4627_v20  ;;  %4623 = vmatprep.subr.bf16.mxu0 %v4754_v3  ;;  %v123_v20 = vld [vmem:[%s5510_s2 + $0x2e8] sm:$0xff] }
  0x36   :  { %4629 = vmatprep.subr.bf16.mxu1 %v4754_v3  ;;  %4304 = vmatprep.mubr.msk.f32.mxu0 %vm4755_vm0, %v4756_v11  ;;  %v4687_v21 = vpack.c.bf16 %v123_v20, %v122_v19  ;;  %v3919_v20 = vld [vmem:[%s5511_s3 + $0x6] ss:$0 sm:$0xff] }
  0x37   :  { %4315 = vmatprep.mubr.msk.f32.mxu1 %vm4755_vm0, %v4756_v11 }
  0x38   :  { %4625 = vmatpush3.bf16.msra.mxu0 %v4624_v25  ;;  %v4684_v25 = vpack.c.bf16 %v121_v23, %v120_v22 }
  0x39   :  { %4631 = vmatpush3.bf16.msra.mxu1 %v4630_v26  ;;  %4632 = vmatprep.subr.bf16.mxu0 %v4754_v3  ;;  %v125_v26 = vld [vmem:[%s5510_s2 + $0x2f8] sm:$0xff] }
  0x3a   :  { %4638 = vmatprep.subr.bf16.mxu1 %v4754_v3  ;;  %v4690_v27 = vpack.c.bf16 %v125_v26, %v124_v24  ;;  %v3920_v24 = vld [vmem:[%s5511_s3 + $0x7] ss:$0 sm:$0xff] }
  0x3b   :  { %4305 = vmatmul.mubr.msk.f32.vlgmr.msra.gmra.mrb[12].mxu0 %vm294_vm1, %v27_v31 }
  0x3c   :  { %4316 = vmatmul.mubr.msk.f32.vlgmr.msra.gmra.mrb[12].mxu1 %vm294_vm1, %v27_v31  ;;  %4634 = vmatpush3.bf16.msra.mxu0 %v4633_v32 }
  0x3d   :  { %4640 = vmatpush3.bf16.msra.mxu1 %v4639_v33  ;;  %4635 = vmatprep.subr.bf16.mxu0 %v4754_v3 }
  0x3e   :  { %4641 = vmatprep.subr.bf16.mxu1 %v4754_v3  ;;  %4326 = vmatprep.mubr.msk.f32.mxu0 %vm4755_vm0, %v4756_v11 }
  0x3f   :  { %4337 = vmatprep.mubr.msk.f32.mxu1 %vm4755_vm0, %v4756_v11 }
  0x40   :  { %4637 = vmatpush3.bf16.msra.mxu0 %v4636_v38 }
  0x41   :  { %4643 = vmatpush3.bf16.msra.mxu1 %v4642_v39  ;;  %4644 = vmatprep.subr.bf16.mxu0 %v4754_v3 }
  0x42   :  { %4650 = vmatprep.subr.bf16.mxu1 %v4754_v3 }
  0x43   :  { %4327 = vmatmul.mubr.msk.f32.vlgmr.msra.gmra.mrb[14].mxu0 %vm294_vm1, %v27_v31 }
  0x44   :  { %4338 = vmatmul.mubr.msk.f32.vlgmr.msra.gmra.mrb[14].mxu1 %vm294_vm1, %v27_v31  ;;  %4646 = vmatpush3.bf16.msra.mxu0 %v4645_v44  ;;  %v3922_v44 = vld [vmem:[%s5511_s3 + $0x9] ss:$0 sm:$0xff] }
  0x45   :  { %4652 = vmatpush3.bf16.msra.mxu1 %v4651_v45  ;;  %4647 = vmatprep.subr.bf16.mxu0 %v4754_v3 }
  0x46   :  { %4653 = vmatprep.subr.bf16.mxu1 %v4754_v3  ;;  %4348 = vmatprep.mubr.msk.f32.mxu0 %vm4755_vm0, %v4756_v11 }
  0x47   :  { %4359 = vmatprep.mubr.msk.f32.mxu1 %vm4755_vm0, %v4756_v11 }
  0x48   :  { %4649 = vmatpush3.bf16.msra.mxu0 %v4648_v49 }
  0x49   :  { %4655 = vmatpush3.bf16.msra.mxu1 %v4654_v51  ;;  %4656 = vmatprep.subr.bf16.mxu0 %v4754_v3 }
  0x4a   :  { %4662 = vmatprep.subr.bf16.mxu1 %v4754_v3 }
  0x4b   :  { %4349 = vmatmul.mubr.msk.f32.vlgmr.msra.gmra.mrb[16].mxu0 %vm294_vm1, %v28_v54 }
  0x4c   :  { %4360 = vmatmul.mubr.msk.f32.vlgmr.msra.gmra.mrb[16].mxu1 %vm294_vm1, %v28_v54  ;;  %4658 = vmatpush3.bf16.msra.mxu0 %v4657_v55  ;;  %v3923_v55 = vld [vmem:[%s5511_s3 + $0xa] ss:$0 sm:$0xff] }
  0x4d   :  { %4664 = vmatpush3.bf16.msra.mxu1 %v4663_v58  ;;  %4659 = vmatprep.subr.bf16.mxu0 %v4754_v3  ;;  %v3915_v58 = vld [vmem:[%s5511_s3 + $0x2] ss:$0 sm:$0xff] }
  0x4e   :  { %4665 = vmatprep.subr.bf16.mxu1 %v4754_v3  ;;  %4370 = vmatprep.mubr.msk.f32.mxu0 %vm4755_vm0, %v4756_v11 }
  0x4f   :  { %4381 = vmatprep.mubr.msk.f32.mxu1 %vm4755_vm0, %v4756_v11 }
  0x50   :  { %4661 = vmatpush3.bf16.msra.mxu0 %v4660_v62  ;;  %v3916_v62 = vld [vmem:[%s5511_s3 + $0x3] ss:$0 sm:$0xff] }
  0x51   :  { %4667 = vmatpush3.bf16.msra.mxu1 %v4666_v0  ;;  %4668 = vmatprep.subr.bf16.mxu0 %v4754_v3 }
  0x52   :  { %4674 = vmatprep.subr.bf16.mxu1 %v4754_v3 }
  0x53   :  { %4371 = vmatmul.mubr.msk.f32.vlgmr.msra.gmra.mrb[18].mxu0 %vm294_vm1, %v28_v54 }
  0x54   :  { %4382 = vmatmul.mubr.msk.f32.vlgmr.msra.gmra.mrb[18].mxu1 %vm294_vm1, %v28_v54  ;;  %4670 = vmatpush3.bf16.msra.mxu0 %v4669_v5  ;;  %v3926_v5 = vld [vmem:[%s5511_s3 + $0xd] ss:$0 sm:$0xff] }
  0x55   :  { %4676 = vmatpush3.bf16.msra.mxu1 %v4675_v7  ;;  %4671 = vmatprep.subr.bf16.mxu0 %v4754_v3  ;;  %v3917_v7 = vld [vmem:[%s5511_s3 + $0x4] ss:$0 sm:$0xff] }
  0x56   :  { %4677 = vmatprep.subr.bf16.mxu1 %v4754_v3  ;;  %4392 = vmatprep.mubr.msk.f32.mxu0 %vm4755_vm0, %v4756_v11 }
  0x57   :  { %4403 = vmatprep.mubr.msk.f32.mxu1 %vm4755_vm0, %v4756_v11 }
  0x58   :  { %4673 = vmatpush3.bf16.msra.mxu0 %v4672_v12  ;;  %v3918_v12 = vld [vmem:[%s5511_s3 + $0x5] ss:$0 sm:$0xff] }
  0x59   :  { %4679 = vmatpush3.bf16.msra.mxu1 %v4678_v14  ;;  %4680 = vmatprep.subr.bf16.mxu0 %v4754_v3 }
  0x5a   :  { %4686 = vmatprep.subr.bf16.mxu1 %v4754_v3 }
  0x5b   :  { %4393 = vmatmul.mubr.msk.f32.vlgmr.msra.gmra.mrb[20].mxu0 %vm294_vm1, %v29_v17 }
  0x5c   :  { %4404 = vmatmul.mubr.msk.f32.vlgmr.msra.gmra.mrb[20].mxu1 %vm294_vm1, %v29_v17  ;;  %4682 = vmatpush3.bf16.msra.mxu0 %v4681_v18  ;;  %v3928_v18 = vld [vmem:[%s5511_s3 + $0xf] ss:$0 sm:$0xff] }
  0x5d   :  { %4688 = vmatpush3.bf16.msra.mxu1 %v4687_v21  ;;  %4683 = vmatprep.subr.bf16.mxu0 %v4754_v3 }
  0x5e   :  { %4689 = vmatprep.subr.bf16.mxu1 %v4754_v3  ;;  %4414 = vmatprep.mubr.msk.f32.mxu0 %vm4755_vm0, %v4756_v11 }
  0x5f   :  { %4425 = vmatprep.mubr.msk.f32.mxu1 %vm4755_vm0, %v4756_v11 }
  0x60   :  { %4685 = vmatpush3.bf16.msra.mxu0 %v4684_v25 }
  0x61   :  { %4691 = vmatpush3.bf16.msra.mxu1 %v4690_v27  ;;  %4428 = vmatprep.subr.mxu0 %v4756_v11 }
  0x62   :  { %4433 = vmatprep.subr.mxu1 %v4756_v11 }
  0x63   :  { %4415 = vmatmul.mubr.msk.f32.vlgmr.msra.gmra.mrb[22].mxu0 %vm294_vm1, %v29_v17 }
  0x64   :  { %4426 = vmatmul.mubr.msk.f32.vlgmr.msra.gmra.mrb[22].mxu1 %vm294_vm1, %v29_v17  ;;  %4430 = vmatprep.mubr.msk.f32.mxu0 %vm4755_vm0, %v4756_v11  ;;  %v3927_v17 = vld [vmem:[%s5511_s3 + $0xe] ss:$0 sm:$0xff] }
  0x65   :  { %4435 = vmatprep.mubr.msk.f32.mxu1 %vm4755_vm0, %v4756_v11 }
  0xde   :  { %v364_v3 = vpop.f32.mrb[0].mxu0 }
  0xdf   :  { %v4174_v28 = vpop.f32.mrb[1].mxu0  ;;  %v434_v29 = vpop.f32.mrb[0].mxu1  ;;  %v365_v53 = vadd.f32 %v3913_v46, %v364_v3 }
  0xe0   :  { %v4185_v30 = vpop.f32.mrb[1].mxu1  ;;  %v435_v54 = vadd.f32 %v3914_v50, %v434_v29  ;;  %v3929_v28 = vld [vmem:[%s5511_s3 + $0x10] ss:$0 sm:$0xff]  ;;  %v3930_v29 = vld [vmem:[%s5511_s3 + $0x11] ss:$0 sm:$0xff] }
  0xe6   :  { %v504_v31 = vpop.f32.mrb[2].mxu0 }
  0xe7   :  { %v4196_v32 = vpop.f32.mrb[3].mxu0  ;;  %v574_v33 = vpop.f32.mrb[2].mxu1  ;;  %v505_v1 = vadd.f32 %v3915_v58, %v504_v31  ;;  %v1994_v58 = vld [vmem:[%s5509_s1 + $0x8] sm:$0xff] }
  0xe8   :  { %v4207_v34 = vpop.f32.mrb[3].mxu1  ;;  %v575_v2 = vadd.f32 %v3916_v62, %v574_v33 }
  0xee   :  { %v647_v35 = vpop.f32.mrb[4].mxu0 }
  0xef   :  { %v4218_v36 = vpop.f32.mrb[5].mxu0  ;;  %v717_v37 = vpop.f32.mrb[4].mxu1  ;;  %v648_v15 = vadd.f32 %v3917_v7, %v647_v35 }
  0xf0   :  { %v4229_v38 = vpop.f32.mrb[5].mxu1  ;;  %v718_v16 = vadd.f32 %v3918_v12, %v717_v37 }
  0xf6   :  { %v5227_v39 = vpop.f32.mrb[6].mxu0 }
  0xf7   :  { %v4240_v40 = vpop.f32.mrb[7].mxu0  ;;  %v5229_v41 = vpop.f32.mrb[6].mxu1  ;;  %v788_v27 = vadd.f32 %v3919_v20, %v5227_v39 }
  0xf8   :  { %v4251_v42 = vpop.f32.mrb[7].mxu1  ;;  %v858_v3 = vadd.f32 %v3920_v24, %v5229_v41 }
  0xfe   :  { %v930_v45 = vpop.f32.mrb[8].mxu0 }
  0xff   :  { %v931_v47 = vadd.f32 %v3921_v43, %v930_v45  ;;  %v1000_v48 = vpop.f32.mrb[8].mxu1  ;;  %v4262_v49 = vpop.f32.mrb[9].mxu0 }
 0x100   :  { %v1001_v51 = vadd.f32 %v3922_v44, %v1000_v48  ;;  %v4273_v52 = vpop.f32.mrb[9].mxu1  ;;  %v1993_v48 = vld [vmem:[%s5509_s1] sm:$0xff] }
 0x101   :  { %4429 = vmatpush3.xpose.msk.msra.mxu0 %vm1999_vm2, %v931_v47  ;;  %v3961_v49 = vadd.f32 -1.0, %v1993_v48 }
 0x102   :  { %4434 = vmatpush3.xpose.msk.msra.mxu1 %vm1999_vm2, %v1001_v51  ;;  %4438 = vmatprep.subr.mxu0 %v4756_v11 }
 0x103   :  { %4443 = vmatprep.subr.mxu1 %v4756_v11  ;;  %v1997_v50 = vmul.f32 1e+09, %v3961_v49 }
 0x104   :  { %4431 = vmatmul.mubr.msk.f32.vlgmr.msra.gmra.mrb[24].mxu0 %vm1999_vm2, %v365_v53 }
 0x105   :  { %4436 = vmatmul.mubr.msk.f32.vlgmr.msra.gmra.mrb[24].mxu1 %vm1999_vm2, %v435_v54  ;;  %4440 = vmatprep.mubr.msk.f32.mxu0 %vm4755_vm0, %v4756_v11 }
 0x106   :  { %v1070_v57 = vpop.f32.mrb[10].mxu0  ;;  %4445 = vmatprep.mubr.msk.f32.mxu1 %vm4755_vm0, %v4756_v11 }
 0x107   :  { %v1071_v59 = vadd.f32 %v3923_v55, %v1070_v57  ;;  %v1140_v60 = vpop.f32.mrb[10].mxu1  ;;  %v4284_v61 = vpop.f32.mrb[11].mxu0 }
 0x108   :  { %v1141_v63 = vadd.f32 %v3924_v56, %v1140_v60  ;;  %v4295_v0 = vpop.f32.mrb[11].mxu1 }
 0x109   :  { %4439 = vmatpush3.xpose.msk.msra.mxu0 %vm1999_vm2, %v1071_v59  ;;  %v3962_v0 = vadd.f32 -1.0, %v1994_v58 }
 0x10a   :  { %4444 = vmatpush3.xpose.msk.msra.mxu1 %vm1999_vm2, %v1141_v63  ;;  %4448 = vmatprep.subr.mxu0 %v4756_v11 }
 0x10b   :  { %4453 = vmatprep.subr.mxu1 %v4756_v11 }
 0x10c   :  { %4441 = vmatmul.mubr.msk.f32.vlgmr.msra.gmra.mrb[26].mxu0 %vm1999_vm2, %v505_v1 }
 0x10d   :  { %4446 = vmatmul.mubr.msk.f32.vlgmr.msra.gmra.mrb[26].mxu1 %vm1999_vm2, %v575_v2  ;;  %4450 = vmatprep.mubr.msk.f32.mxu0 %vm4755_vm0, %v4756_v11 }
 0x10e   :  { %v1213_v6 = vpop.f32.mrb[12].mxu0  ;;  %4455 = vmatprep.mubr.msk.f32.mxu1 %vm4755_vm0, %v4756_v11 }
 0x10f   :  { %v1214_v8 = vadd.f32 %v3925_v4, %v1213_v6  ;;  %v1283_v9 = vpop.f32.mrb[12].mxu1  ;;  %v4306_v10 = vpop.f32.mrb[13].mxu0 }
 0x110   :  { %v1284_v13 = vadd.f32 %v3926_v5, %v1283_v9  ;;  %v4317_v14 = vpop.f32.mrb[13].mxu1  ;;  %v1998_v5 = vmul.f32 1e+09, %v3962_v0 }
 0x111   :  { %4449 = vmatpush3.xpose.msk.msra.mxu0 %vm1999_vm2, %v1214_v8 }
 0x112   :  { %4454 = vmatpush3.xpose.msk.msra.mxu1 %vm1999_vm2, %v1284_v13  ;;  %4458 = vmatprep.subr.mxu0 %v4756_v11 }
 0x113   :  { %4463 = vmatprep.subr.mxu1 %v4756_v11 }
 0x114   :  { %4451 = vmatmul.mubr.msk.f32.vlgmr.msra.gmra.mrb[28].mxu0 %vm1999_vm2, %v648_v15 }
 0x115   :  { %4456 = vmatmul.mubr.msk.f32.vlgmr.msra.gmra.mrb[28].mxu1 %vm1999_vm2, %v718_v16  ;;  %4460 = vmatprep.mubr.msk.f32.mxu0 %vm4755_vm0, %v4756_v11 }
 0x116   :  { %v1353_v19 = vpop.f32.mrb[14].mxu0  ;;  %4465 = vmatprep.mubr.msk.f32.mxu1 %vm4755_vm0, %v4756_v11 }
 0x117   :  { %v1354_v21 = vadd.f32 %v3927_v17, %v1353_v19  ;;  %v1423_v22 = vpop.f32.mrb[14].mxu1  ;;  %v4328_v23 = vpop.f32.mrb[15].mxu0 }
 0x118   :  { %v1424_v25 = vadd.f32 %v3928_v18, %v1423_v22  ;;  %v4339_v26 = vpop.f32.mrb[15].mxu1 }
 0x119   :  { %4459 = vmatpush3.xpose.msk.msra.mxu0 %vm1999_vm2, %v1354_v21 }
 0x11a   :  { %4464 = vmatpush3.xpose.msk.msra.mxu1 %vm1999_vm2, %v1424_v25  ;;  %4468 = vmatprep.subr.mxu0 %v4756_v11 }
 0x11b   :  { %4473 = vmatprep.subr.mxu1 %v4756_v11 }
 0x11c   :  { %4461 = vmatmul.mubr.msk.f32.vlgmr.msra.gmra.mrb[30].mxu0 %vm1999_vm2, %v788_v27 }
 0x11d   :  { %4466 = vmatmul.mubr.msk.f32.vlgmr.msra.gmra.mrb[30].mxu1 %vm1999_vm2, %v858_v3  ;;  %4470 = vmatprep.mubr.msk.f32.mxu0 %vm4755_vm0, %v4756_v11 }
 0x11e   :  { %4475 = vmatprep.mubr.msk.f32.mxu1 %vm4755_vm0, %v4756_v11  ;;  %v1496_v30 = vpop.f32.mrb[16].mxu0 }
 0x11f   :  { %v1497_v31 = vadd.f32 %v3929_v28, %v1496_v30  ;;  %v4350_v32 = vpop.f32.mrb[17].mxu0  ;;  %v1566_v33 = vpop.f32.mrb[16].mxu1 }
 0x120   :  { %v1567_v34 = vadd.f32 %v3930_v29, %v1566_v33  ;;  %v4361_v35 = vpop.f32.mrb[17].mxu1 }
 0x121   :  { %4469 = vmatpush3.msra.mxu0 %v1497_v31 }
 0x122   :  { %4474 = vmatpush3.msra.mxu1 %v1567_v34  ;;  %4478 = vmatprep.subr.mxu0 %v4756_v11 }
 0x123   :  { %4483 = vmatprep.subr.mxu1 %v4756_v11 }
 0x126   :  { %v5329_v36 = vpop.f32.mrb[18].mxu0 }
 0x127   :  { %v4372_v37 = vpop.f32.mrb[19].mxu0  ;;  %v5331_v38 = vpop.f32.mrb[18].mxu1 }
 0x128   :  { %v4383_v39 = vpop.f32.mrb[19].mxu1 }
 0x12e   :  { %v5333_v40 = vpop.f32.mrb[20].mxu0 }
 0x12f   :  { %v4394_v41 = vpop.f32.mrb[21].mxu0  ;;  %v5335_v42 = vpop.f32.mrb[20].mxu1 }
 0x130   :  { %v4405_v43 = vpop.f32.mrb[21].mxu1 }
 0x136   :  { %v5337_v44 = vpop.f32.mrb[22].mxu0 }
 0x137   :  { %v5339_v45 = vpop.f32.mrb[22].mxu1  ;;  %v4416_v46 = vpop.f32.mrb[23].mxu0 }
 0x138   :  { %v4427_v47 = vpop.f32.mrb[23].mxu1 }
 0x1d7   :  { %v2072_v51 = vpop.f32.mrb[24].mxu0 }
 0x1d8   :  { %v2073_v52 = vadd.f32 %v2072_v51, %v1997_v50  ;;  %v2148_v53 = vpop.f32.mrb[24].mxu1  ;;  %v4432_v54 = vpop.f32.mrb[25].mxu0 }
 0x1d9   :  { %v4437_v55 = vpop.f32.mrb[25].mxu1  ;;  %v2149_v56 = vadd.f32 %v2148_v53, %v1997_v50 }
 0x1da   :  { %v2608_v57 = vsel %vm1999_vm2, %v2073_v52, -inf }
 0x1db   :  { %2609 = vmax.xlane.f32.xlu0 %v2608_v57  ;;  %v2611_v59 = vsel %vm1999_vm2, %v2149_v56, -inf }
 0x1df   :  { %2612 = vmax.xlane.f32.xlu0 %v2611_v59  ;;  %v2224_v60 = vpop.f32.mrb[26].mxu0 }
 0x1e0   :  { %v2300_v61 = vpop.f32.mrb[26].mxu1  ;;  %v2225_v62 = vadd.f32 %v2224_v60, %v1997_v50  ;;  %v4442_v63 = vpop.f32.mrb[27].mxu0 }
 0x1e1   :  { %v4447_v1 = vpop.f32.mrb[27].mxu1  ;;  %v2301_v2 = vadd.f32 %v2300_v61, %v1997_v50 }
 0x1e2   :  { %v2614_v4 = vsel %vm1999_vm2, %v2225_v62, -inf }
 0x1e3   :  { %2615 = vmax.xlane.f32.xlu1 %v2614_v4  ;;  %v2617_v6 = vsel %vm1999_vm2, %v2301_v2, -inf }
 0x1e7   :  { %2618 = vmax.xlane.f32.xlu1 %v2617_v6  ;;  %v2376_v7 = vpop.f32.mrb[28].mxu0 }
 0x1e8   :  { %v2452_v8 = vpop.f32.mrb[28].mxu1  ;;  %v2377_v9 = vadd.f32 %v2376_v7, %v1998_v5  ;;  %v4452_v10 = vpop.f32.mrb[29].mxu0 }
 0x1e9   :  { %v2453_v12 = vadd.f32 %v2452_v8, %v1998_v5  ;;  %v4457_v13 = vpop.f32.mrb[29].mxu1 }
 0x1ea   :  { %v2620_v14 = vsel %vm1999_vm2, %v2377_v9, -inf }
 0x1eb   :  { %v2623_v15 = vsel %vm1999_vm2, %v2453_v12, -inf  ;;  %2621 = vmax.xlane.f32.xlu0 %v2620_v14 }
 0x1ec   :  { %2624 = vmax.xlane.f32.xlu1 %v2623_v15  ;;  %v3932_v15 = vld [vmem:[%s5511_s3 + $0x13] ss:$0 sm:$0xff] }
 0x1ef   :  { %v2528_v16 = vpop.f32.mrb[30].mxu0 }
 0x1f0   :  { %v2529_v17 = vadd.f32 %v2528_v16, %v1998_v5  ;;  %v2604_v18 = vpop.f32.mrb[30].mxu1  ;;  %v4462_v19 = vpop.f32.mrb[31].mxu0 }
 0x1f1   :  { %v2605_v20 = vadd.f32 %v2604_v18, %v1998_v5  ;;  %v4467_v21 = vpop.f32.mrb[31].mxu1  ;;  %v1707_v19 = vadd.f32 %v3932_v15, %v5331_v38  ;;  %v3934_v38 = vld [vmem:[%s5511_s3 + $0x15] ss:$0 sm:$0xff] }
 0x1f2   :  { %v2626_v22 = vsel %vm1999_vm2, %v2529_v17, -inf }
 0x1f3   :  { %v2629_v23 = vsel %vm1999_vm2, %v2605_v20, -inf  ;;  %2627 = vmax.xlane.f32.xlu0 %v2626_v22 }
 0x1f4   :  { %2630 = vmax.xlane.f32.xlu1 %v2629_v23 }
 0x268   :  { %v2610_v24 = vpop.xlane.xlu0 %2609 }
 0x269   :  { %v2632_v25 = vsub.f32 %v2073_v52, %v2610_v24 }
 0x26b   :  { %v2640_v26 = vmul.f32 1.442695, %v2632_v25 }
 0x26c   :  { %v2613_v27 = vpop.xlane.xlu0 %2612 }
 0x26d   :  { %4698 = vpow2.f32 %v2640_v26  ;;  %v2633_v3 = vsub.f32 %v2149_v56, %v2613_v27  ;;  %v1850_v27 = vadd.f32 %v3934_v38, %v5335_v42 }
 0x26f   :  { %v2642_v28 = vmul.f32 1.442695, %v2633_v3 }
 0x270   :  { %v2616_v29 = vpop.xlane.xlu1 %2615 }
 0x271   :  { %4700 = vpow2.f32 %v2642_v28  ;;  %v2634_v30 = vsub.f32 %v2225_v62, %v2616_v29  ;;  %v3936_v29 = vld [vmem:[%s5511_s3 + $0x17] ss:$0 sm:$0xff] }
 0x273   :  { %v2644_v31 = vmul.f32 1.442695, %v2634_v30 }
 0x274   :  { %v2619_v32 = vpop.xlane.xlu1 %2618 }
 0x275   :  { %4702 = vpow2.f32 %v2644_v31  ;;  %v2635_v33 = vsub.f32 %v2301_v2, %v2619_v32 }
 0x277   :  { %v4699_v34 = vpop.eup %4698  ;;  %v2646_v35 = vmul.f32 1.442695, %v2635_v33  ;;  %v1990_v33 = vadd.f32 %v3936_v29, %v5339_v45 }
 0x278   :  { %v2622_v37 = vpop.xlane.xlu0 %2621  ;;  %v2656_v39 = vsel %vm1999_vm2, %v4699_v34, 0.0 }
 0x279   :  { %4704 = vpow2.f32 %v2646_v35  ;;  %v2625_v41 = vpop.xlane.xlu1 %2624  ;;  %v2636_v43 = vsub.f32 %v2377_v9, %v2622_v37  ;;  %2657 = vadd.xlane.f32.xlu0 %v2656_v39  ;;  %v3931_v9 = vld [vmem:[%s5511_s3 + $0x12] ss:$0 sm:$0xff]  ;;  %v3280_v37 = vld [vmem:[%s5512_s4] sm:$0xff]  ;;  %v3281_v39 = vld [vmem:[%s5512_s4 + $0x8] sm:$0xff] }
 0x27a   :  { %v2637_v46 = vsub.f32 %v2453_v12, %v2625_v41  ;;  %v1637_v14 = vadd.f32 %v3931_v9, %v5329_v36  ;;  %v3933_v36 = vld [vmem:[%s5511_s3 + $0x14] ss:$0 sm:$0xff] }
 0x27b   :  { %v4701_v47 = vpop.eup %4700  ;;  %v2648_v48 = vmul.f32 1.442695, %v2636_v43  ;;  %v1780_v23 = vadd.f32 %v3933_v36, %v5333_v40  ;;  %v3935_v40 = vld [vmem:[%s5511_s3 + $0x16] ss:$0 sm:$0xff] }
 0x27c   :  { %v2650_v49 = vmul.f32 1.442695, %v2637_v46  ;;  %v2659_v50 = vsel %vm1999_vm2, %v4701_v47, 0.0  ;;  %v1920_v31 = vadd.f32 %v3935_v40, %v5337_v44  ;;  %v3282_v41 = vld [vmem:[%s5512_s4 + $0x10] sm:$0xff] }
 0x27d   :  { %4706 = vpow2.f32 %v2648_v48  ;;  %2660 = vadd.xlane.f32.xlu1 %v2659_v50  ;;  %v3284_v50 = vld [vmem:[%s5512_s4 + $0x20] sm:$0xff] }
 0x27e   :  { %4708 = vpow2.f32 %v2650_v49 }
 0x27f   :  { %v4703_v51 = vpop.eup %4702 }
 0x280   :  { %v2628_v52 = vpop.xlane.xlu0 %2627  ;;  %v2662_v53 = vsel %vm1999_vm2, %v4703_v51, 0.0 }
 0x281   :  { %v2631_v54 = vpop.xlane.xlu1 %2630  ;;  %v2638_v55 = vsub.f32 %v2529_v17, %v2628_v52  ;;  %2663 = vadd.xlane.f32.xlu0 %v2662_v53  ;;  %v3285_v53 = vld [vmem:[%s5512_s4 + $0x28] sm:$0xff] }
 0x282   :  { %v2639_v56 = vsub.f32 %v2605_v20, %v2631_v54 }
 0x283   :  { %v4705_v57 = vpop.eup %4704  ;;  %v2652_v58 = vmul.f32 1.442695, %v2638_v55 }
 0x284   :  { %v2654_v59 = vmul.f32 1.442695, %v2639_v56  ;;  %v2665_v60 = vsel %vm1999_vm2, %v4705_v57, 0.0  ;;  %v3286_v56 = vld [vmem:[%s5512_s4 + $0x30] sm:$0xff] }
 0x285   :  { %4710 = vpow2.f32 %v2652_v58  ;;  %2666 = vadd.xlane.f32.xlu1 %v2665_v60  ;;  %v3287_v58 = vld [vmem:[%s5512_s4 + $0x38] sm:$0xff] }
 0x286   :  { %4712 = vpow2.f32 %v2654_v59 }
 0x287   :  { %v5359_v61 = vpop.eup %4706 }
 0x288   :  { %v5361_v62 = vpop.eup %4708  ;;  %v2668_v63 = vsel %vm1999_vm2, %v5359_v61, 0.0 }
 0x289   :  { %v2671_v0 = vsel %vm1999_vm2, %v5361_v62, 0.0  ;;  %2669 = vadd.xlane.f32.xlu0 %v2668_v63 }
 0x28a   :  { %2672 = vadd.xlane.f32.xlu1 %v2671_v0 }
 0x28f   :  { %v5367_v1 = vpop.eup %4710 }
 0x290   :  { %v5369_v2 = vpop.eup %4712  ;;  %v2674_v4 = vsel %vm1999_vm2, %v5367_v1, 0.0 }
 0x291   :  { %v2677_v5 = vsel %vm1999_vm2, %v5369_v2, 0.0  ;;  %2675 = vadd.xlane.f32.xlu0 %v2674_v4 }
 0x292   :  { %2678 = vadd.xlane.f32.xlu1 %v2677_v5 }
 0x306   :  { %v2658_v6 = vpop.xlane.xlu0 %2657 }
 0x307   :  { %4714 = vrcp.f32 %v2658_v6 }
 0x30a   :  { %v2661_v7 = vpop.xlane.xlu1 %2660 }
 0x30b   :  { %4716 = vrcp.f32 %v2661_v7 }
 0x30e   :  { %v2664_v8 = vpop.xlane.xlu0 %2663 }
 0x30f   :  { %4718 = vrcp.f32 %v2664_v8 }
 0x311   :  { %v4715_v10 = vpop.eup %4714 }
 0x312   :  { %v2688_v12 = vmul.f32 %v4715_v10, %v4699_v34  ;;  %v2667_v13 = vpop.xlane.xlu1 %2666 }
 0x313   :  { %4720 = vrcp.f32 %v2667_v13 }
 0x314   :  { %4471 = vmatmul.mubr.msk.f32.vlgmr.msra.gmra.mrb[32].mxu0 %vm1999_vm2, %v2688_v12 }
 0x315   :  { %v4717_v16 = vpop.eup %4716  ;;  %4479 = vmatpush3.msra.mxu0 %v1637_v14  ;;  %4480 = vmatprep.mubr.msk.f32.mxu0 %vm4755_vm0, %v4756_v11 }
 0x316   :  { %v2689_v17 = vmul.f32 %v4717_v16, %v4701_v47  ;;  %v2670_v18 = vpop.xlane.xlu0 %2669  ;;  %4488 = vmatprep.subr.mxu0 %v4756_v11  ;;  %v3283_v47 = vld [vmem:[%s5512_s4 + $0x18] sm:$0xff]  ;;  %v3995_v16 = vld [vmem:[%s5513_s5] ss:$0 sm:$0xff]  ;;  %s4757_s5 = smov [#allocation2]  }
 0x317   :  { %v2673_v20 = vpop.xlane.xlu1 %2672  ;;  %4722 = vrcp.f32 %v2670_v18  ;;  %s3902_s21 = sshll.u32 %s4757_s5, 4  ;;  %s3903_s21 = int_to_ptr.vmem [resolvable:$true] %s3902_s21 }
 0x318   :  { %4724 = vrcp.f32 %v2673_v20  ;;  %4476 = vmatmul.mubr.msk.f32.vlgmr.msra.gmra.mrb[32].mxu1 %vm1999_vm2, %v2689_v17  ;;  %s4730_s22 = scalar_lea.vmem %s3903_s21, 256  ;;  %p4735_p1 = scmp.lt.s32.totalorder %s3903_s21, %s3903_s21 }
 0x319   :  { %v4719_v21 = vpop.eup %4718  ;;  %4484 = vmatpush3.msra.mxu1 %v1707_v19  ;;  %4485 = vmatprep.mubr.msk.f32.mxu1 %vm4755_vm0, %v4756_v11  ;;  %p4731_p0 = scmp.ne.s32.totalorder %s3903_s21, %s4730_s22  ;;  %p4736_p2 = scmp.lt.s32.totalorder %s4730_s22, %s4730_s22 }
 0x31a   :  { %v2690_v22 = vmul.f32 %v4719_v21, %v4703_v51  ;;  %4493 = vmatprep.subr.mxu1 %v4756_v11 }
 0x31b   :  { %p4737_p3 = por %p4736_p2, %p4735_p1 }
 0x31c   :  { %4481 = vmatmul.mubr.msk.f32.vlgmr.msra.gmra.mrb[34].mxu0 %vm1999_vm2, %v2690_v22 }
 0x31d   :  { %v4721_v24 = vpop.eup %4720  ;;  %4489 = vmatpush3.msra.mxu0 %v1780_v23  ;;  %4490 = vmatprep.mubr.msk.f32.mxu0 %vm4755_vm0, %v4756_v11  ;;  %p4738_p4 = pnand %p4737_p3, %p4731_p0 }
 0x31e   :  { %v2691_v25 = vmul.f32 %v4721_v24, %v4705_v57  ;;  %v2676_v26 = vpop.xlane.xlu0 %2675  ;;  %4498 = vmatprep.subr.mxu0 %v4756_v11 }
 0x31f   :  { %v2679_v3 = vpop.xlane.xlu1 %2678  ;;  %4726 = vrcp.f32 %v2676_v26 }
 0x320   :  { %4728 = vrcp.f32 %v2679_v3  ;;  %4486 = vmatmul.mubr.msk.f32.vlgmr.msra.gmra.mrb[34].mxu1 %vm1999_vm2, %v2691_v25 }
 0x321   :  { %v4723_v28 = vpop.eup %4722  ;;  %4494 = vmatpush3.msra.mxu1 %v1850_v27  ;;  %4495 = vmatprep.mubr.msk.f32.mxu1 %vm4755_vm0, %v4756_v11 }
 0x322   :  { %v4725_v30 = vpop.eup %4724  ;;  %v2692_v42 = vmul.f32 %v4723_v28, %v5359_v61  ;;  %4503 = vmatprep.subr.mxu1 %v4756_v11 }
 0x323   :  { %v2693_v32 = vmul.f32 %v4725_v30, %v5361_v62 }
 0x324   :  { %4491 = vmatmul.mubr.msk.f32.vlgmr.msra.gmra.mrb[36].mxu0 %vm1999_vm2, %v2692_v42 }
 0x325   :  { %4496 = vmatmul.mubr.msk.f32.vlgmr.msra.gmra.mrb[36].mxu1 %vm1999_vm2, %v2693_v32  ;;  %4499 = vmatpush3.msra.mxu0 %v1920_v31 }
 0x326   :  { %4504 = vmatpush3.msra.mxu1 %v1990_v33  ;;  %4500 = vmatprep.mubr.msk.f32.mxu0 %vm4755_vm0, %v4756_v11 }
 0x327   :  { %4505 = vmatprep.mubr.msk.f32.mxu1 %vm4755_vm0, %v4756_v11  ;;  %4508 = vmatprep.subr.mxu0 %v4756_v11 }
 0x328   :  { %4513 = vmatprep.subr.mxu1 %v4756_v11 }
 0x329   :  { %v4727_v44 = vpop.eup %4726 }
 0x32a   :  { %v4729_v34 = vpop.eup %4728  ;;  %v2694_v45 = vmul.f32 %v4727_v44, %v5367_v1 }
 0x32b   :  { %v2695_v35 = vmul.f32 %v4729_v34, %v5369_v2 }
 0x32c   :  { %4501 = vmatmul.mubr.msk.f32.vlgmr.msra.gmra.mrb[38].mxu0 %vm1999_vm2, %v2694_v45 }
 0x32d   :  { %4506 = vmatmul.mubr.msk.f32.vlgmr.msra.gmra.mrb[38].mxu1 %vm1999_vm2, %v2695_v35  ;;  %4510 = vmatprep.mubr.msk.f32.mxu0 %vm4755_vm0, %v4756_v11 }
 0x32e   :  { %4515 = vmatprep.mubr.msk.f32.mxu1 %vm4755_vm0, %v4756_v11  ;;  %4509 = vmatpush3.msra.mxu0 %v3280_v37 }
 0x32f   :  { %4518 = vmatprep.subr.mxu0 %v4756_v11  ;;  %4514 = vmatpush3.msra.mxu1 %v3281_v39 }
 0x330   :  { %4523 = vmatprep.subr.mxu1 %v4756_v11 }
 0x3e7   :  { %v2765_v43 = vpop.f32.mrb[32].mxu0 }
 0x3e8   :  { %v4472_v46 = vpop.f32.mrb[33].mxu0  ;;  %4511 = vmatmul.mubr.msk.f32.vlgmr.msra.gmra.mrb[40].mxu0 %vm1999_vm2, %v2765_v43 }
 0x3e9   :  { %4519 = vmatpush3.msra.mxu0 %v3282_v41  ;;  %4520 = vmatprep.mubr.msk.f32.mxu0 %vm4755_vm0, %v4756_v11 }
 0x3ea   :  { %4528 = vmatprep.subr.mxu0 %v4756_v11 }
 0x3eb   :  { %v2838_v48 = vpop.f32.mrb[32].mxu1 }
 0x3ec   :  { %v4477_v49 = vpop.f32.mrb[33].mxu1  ;;  %4516 = vmatmul.mubr.msk.f32.vlgmr.msra.gmra.mrb[40].mxu1 %vm1999_vm2, %v2838_v48 }
 0x3ed   :  { %4524 = vmatpush3.msra.mxu1 %v3283_v47  ;;  %4525 = vmatprep.mubr.msk.f32.mxu1 %vm4755_vm0, %v4756_v11 }
 0x3ee   :  { %4533 = vmatprep.subr.mxu1 %v4756_v11 }
 0x3ef   :  { %v2911_v51 = vpop.f32.mrb[34].mxu0 }
 0x3f0   :  { %v4482_v52 = vpop.f32.mrb[35].mxu0  ;;  %4521 = vmatmul.mubr.msk.f32.vlgmr.msra.gmra.mrb[42].mxu0 %vm1999_vm2, %v2911_v51 }
 0x3f1   :  { %4529 = vmatpush3.msra.mxu0 %v3284_v50  ;;  %4530 = vmatprep.mubr.msk.f32.mxu0 %vm4755_vm0, %v4756_v11 }
 0x3f2   :  { %4538 = vmatprep.subr.mxu0 %v4756_v11 }
 0x3f3   :  { %v2984_v54 = vpop.f32.mrb[34].mxu1 }
 0x3f4   :  { %v4487_v55 = vpop.f32.mrb[35].mxu1  ;;  %4526 = vmatmul.mubr.msk.f32.vlgmr.msra.gmra.mrb[42].mxu1 %vm1999_vm2, %v2984_v54 }
 0x3f5   :  { %4534 = vmatpush3.msra.mxu1 %v3285_v53  ;;  %4535 = vmatprep.mubr.msk.f32.mxu1 %vm4755_vm0, %v4756_v11 }
 0x3f6   :  { %4543 = vmatprep.subr.mxu1 %v4756_v11 }
 0x3f7   :  { %v3057_v57 = vpop.f32.mrb[36].mxu0 }
 0x3f8   :  { %v3130_v59 = vpop.f32.mrb[36].mxu1  ;;  %v4492_v60 = vpop.f32.mrb[37].mxu0  ;;  %4531 = vmatmul.mubr.msk.f32.vlgmr.msra.gmra.mrb[44].mxu0 %vm1999_vm2, %v3057_v57 }
 0x3f9   :  { %v4497_v61 = vpop.f32.mrb[37].mxu1  ;;  %4536 = vmatmul.mubr.msk.f32.vlgmr.msra.gmra.mrb[44].mxu1 %vm1999_vm2, %v3130_v59  ;;  %4539 = vmatpush3.msra.mxu0 %v3286_v56 }
 0x3fa   :  { %4540 = vmatprep.mubr.msk.f32.mxu0 %vm4755_vm0, %v4756_v11  ;;  %4544 = vmatpush3.msra.mxu1 %v3287_v58 }
 0x3fb   :  { %4545 = vmatprep.mubr.msk.f32.mxu1 %vm4755_vm0, %v4756_v11 }
 0x3ff   :  { %v3203_v62 = vpop.f32.mrb[38].mxu0 }
 0x400   :  { %v3276_v63 = vpop.f32.mrb[38].mxu1  ;;  %v4502_v0 = vpop.f32.mrb[39].mxu0  ;;  %4541 = vmatmul.mubr.msk.f32.vlgmr.msra.gmra.mrb[46].mxu0 %vm1999_vm2, %v3203_v62 }
 0x401   :  { %v4507_v1 = vpop.f32.mrb[39].mxu1  ;;  %4546 = vmatmul.mubr.msk.f32.vlgmr.msra.gmra.mrb[46].mxu1 %vm1999_vm2, %v3276_v63 }
 0x4bb   :  { %v3357_v2 = vpop.f32.mrb[40].mxu0 }
 0x4bc   :  { %v4512_v4 = vpop.f32.mrb[41].mxu0  ;;  %v3872_v6 = vsel %vm294_vm1, %v3357_v2, 0.0 }
 0x4bf   :  { %v3430_v5 = vpop.f32.mrb[40].mxu1 }
 0x4c0   :  { %v3873_v7 = vsel %vm294_vm1, %v3430_v5, 0.0  ;;  %v4517_v8 = vpop.f32.mrb[41].mxu1 }
 0x4c1   :  { %v3874_v9 = vadd.f32 %v3873_v7, %v3872_v6 }
 0x4c3   :  { %v3503_v10 = vpop.f32.mrb[42].mxu0 }
 0x4c4   :  { %v3875_v11 = vsel %vm294_vm1, %v3503_v10, 0.0  ;;  %v4522_v12 = vpop.f32.mrb[43].mxu0 }
 0x4c5   :  { %v3876_v13 = vadd.f32 %v3875_v11, %v3874_v9 }
 0x4c7   :  { %v3576_v14 = vpop.f32.mrb[42].mxu1 }
 0x4c8   :  { %v3877_v15 = vsel %vm294_vm1, %v3576_v14, 0.0  ;;  %v4527_v17 = vpop.f32.mrb[43].mxu1 }
 0x4c9   :  { %v3878_v18 = vadd.f32 %v3877_v15, %v3876_v13 }
 0x4cb   :  { %v3893_v19 = vadd.f32 %v3995_v16, %v3878_v18  ;;  %v3649_v20 = vpop.f32.mrb[44].mxu0 }
 0x4cc   :  { %v3879_v36 = vsel %vm294_vm1, %v3649_v20, 0.0  ;;  %v3722_v21 = vpop.f32.mrb[44].mxu1  ;;  %v4532_v22 = vpop.f32.mrb[45].mxu0 }
 0x4cd   :  { %3895 = vst.msk [vmem:[#allocation2] sm:$0xff] %vm294_vm1, %v3893_v19  ;;  %v3880_v23 = vsel %vm294_vm1, %v3722_v21, 0.0  ;;  %v4537_v38 = vpop.f32.mrb[45].mxu1 }
 0x4ce   :  { %v3881_v24 = vadd.f32 %v3880_v23, %v3879_v36 }
 0x4d3   :  { %v3795_v25 = vpop.f32.mrb[46].mxu0 }
 0x4d4   :  { %v3882_v26 = vsel %vm294_vm1, %v3795_v25, 0.0  ;;  %v3868_v27 = vpop.f32.mrb[46].mxu1  ;;  %v4542_v3 = vpop.f32.mrb[47].mxu0 }
 0x4d5   :  { %v3883_v40 = vadd.f32 %v3882_v26, %v3881_v24  ;;  %v4547_v28 = vpop.f32.mrb[47].mxu1  ;;  %v3884_v29 = vsel %vm294_vm1, %v3868_v27, 0.0 }
 0x4d7   :  { %v3885_v30 = vadd.f32 %v3884_v29, %v3883_v40 }
 0x4d9   :  { %v3894_v42 = vadd.f32 %v3995_v16, %v3885_v30 }
 0x4db   :  { %3896 = vst.msk [vmem:[#allocation2 + $0x8] sm:$0xff] %vm294_vm1, %v3894_v42 }
 0x4dc   :  { %4741 = shalt.err (!%p4738_p4)
}
 0x4dd   :  { %s4742_s0 = scalar_lea.hbm %s5514_s6, 256 }
 0x4de   :  { %p4743_p5 = scmp.ne.s32.totalorder %s5514_s6, %s4742_s0  ;;  %p4746_p6 = scmp.lt.u32.totalorder %s4742_s0, %s5514_s6 }
 0x4e0   :  { %p4748_p7 = pnand %p4746_p6, %p4743_p5 }
 0x4e2   :  { %4751 = shalt.err (!%p4748_p7)
}
 0x4e3   :  { %s4758_s29 = smov 128   ;;  %s4759_s30 = smov 8  }
 0x4e4   :  { %3908 = dma.vmem_to_hbm [thread:$0]  %s3903_s21, 256, %s5514_s6, [#allocation3], %s4758_s29, %s4758_s29, %s4759_s30  }
 0x4e5   :  { %4752 = dma.done.wait [#allocation3], 256  }
 0x4e6   :  { %4753 = vsyncadd [#allocation3], 4294967040 }
 0x4e7   :  { %3912 = vsyncpa [#allocation3], 1 }

</bundles_post_ra>
